<compile_context>
chip_gen: v7x
topology: tpu7x:2x2x1
jax: 0.10.0
libtpu: 0.0.40
codegen_flags: <defaults>
</compile_context>

<pallas_src>
import jax
import jax.numpy as jnp
from jax import lax
from jax.experimental import pallas as pl
from jax.experimental.pallas import tpu as pltpu


_S = 8  # internal LSTM "batch" rows = one sublane tile; all rows identical
        # because the module repeat_interleaves the same vector along dim 1.


def _lstm_decoder_kernel(x_ref, w1ih_ref, w1hh_ref, b1_ref,
                         w2ih_ref, w2hh_ref, b2_ref, wout_ref, bout_ref,
                         out_ref,
                         g1x_s, h2hist_s):
    """Stacked 2-layer LSTM decoder + linear head, all T steps in-kernel.

    x_ref    : (T, E)        raw input, time-major (T = dim0 of PyTorch input)
    w1ih_ref : (E, 4H)       layer-1 input->gates   (gate order i, f, o, g)
    w1hh_ref : (H, 4H)       layer-1 hidden->gates
    b1_ref   : (1, 4H)       layer-1 combined bias
    w2ih_ref : (H, 4H)       layer-2 input->gates
    w2hh_ref : (H, 4H)       layer-2 hidden->gates
    b2_ref   : (1, 4H)       layer-2 combined bias
    wout_ref : (H, Fp), bout_ref : (1, Fp)   (Fp = F zero-padded to 128 lanes)
    out_ref  : (T*_S, Fp)
    g1x_s    : (T, _S, 4H)   scratch: pre-replicated layer-1 input projection
    h2hist_s : (T*_S, H)     scratch: layer-2 hidden history
    """
    T = x_ref.shape[0]
    H = w1hh_ref.shape[0]

    # Layer-1 input projection for all T steps in one MXU matmul, bias folded,
    # then replicated across the 8 identical sublane rows once (outside the
    # recurrent loop) so each step does a plain aligned load.
    g1x = (jnp.dot(x_ref[...], w1ih_ref[...],
                   preferred_element_type=jnp.float32) + b1_ref[...])
    g1x_s[...] = jnp.broadcast_to(g1x[:, None, :], (T, _S, 4 * H))

    # Tiny layer-2 bias: sublane-broadcast once, carried in vregs.
    b2b = jnp.broadcast_to(b2_ref[...], (_S, 4 * H))

    def gate_math(gates, c_prev):
        # Gate layout along the 4H axis is (i, f, o, g): the three sigmoid
        # gates are lane-contiguous -> one batched EUP sigmoid push + one tanh
        # push for g (plus tanh(c)).  At H=128 all slices are tile-aligned.
        s = jax.nn.sigmoid(gates[:, :3 * H])
        g = jnp.tanh(gates[:, 3 * H:])
        i = s[:, 0 * H:1 * H]
        f = s[:, 1 * H:2 * H]
        o = s[:, 2 * H:3 * H]
        c = f * c_prev + i * g
        h = o * jnp.tanh(c)
        return h, c

    def step(t, carry):
        h1, c1, h2, c2 = carry
        # Layer-2 recurrent product: no dependency on layer 1 (no concat), so
        # it overlaps layer-1's matmul/gate math; sum-of-dots form lets v7x
        # accumulate in the MRB.  Weights are re-read from VMEM (vld slots are
        # idle) instead of being pinned in vregs.
        g2h = jnp.dot(h2, w2hh_ref[...], preferred_element_type=jnp.float32)
        # Layer 1: only the recurrent matmul remains on the serial path.
        gates1 = g1x_s[t] + jnp.dot(h1, w1hh_ref[...],
                                    preferred_element_type=jnp.float32)
        h1, c1 = gate_math(gates1, c1)
        # Layer 2.
        gates2 = (jnp.dot(h1, w2ih_ref[...],
                          preferred_element_type=jnp.float32) + g2h + b2b)
        h2, c2 = gate_math(gates2, c2)
        # Lane-dense (S, H) store of the layer-2 hidden for the batched head.
        row = pl.multiple_of(t * _S, _S)
        h2hist_s[pl.ds(row, _S), :] = h2
        return h1, c1, h2, c2

    z = jnp.zeros((_S, H), jnp.float32)
    lax.fori_loop(0, T, step, (z, z, z, z), unroll=min(T, 8))

    # Batched, lane-dense output head: one (T*_S, H) @ (H, Fp) matmul with an
    # unmasked 128-lane store.
    out_ref[...] = (jnp.dot(h2hist_s[...], wout_ref[...],
                            preferred_element_type=jnp.float32)
                    + bout_ref[...]).astype(out_ref.dtype)


def _reorder_gates(w):
    """Permute the 4H gate axis from PyTorch's (i, f, g, o) to (i, f, o, g)."""
    i, f, g, o = jnp.split(w, 4, axis=-1)
    return jnp.concatenate([i, f, o, g], axis=-1)


def lstm_decoder2_forward(x, params, seq_len):
    """x: (B, E) float32 -> (B, seq_len, n_features) float32."""
    B, E = x.shape
    H = params["w1_hh"].shape[0]
    F = params["w_out"].shape[1]
    F_pad = ((F + 127) // 128) * 128   # lane-dense output head

    # Gate-column permutation (i,f,g,o) -> (i,f,o,g): done once on the host.
    w1_ih = _reorder_gates(params["w1_ih"])
    w1_hh = _reorder_gates(params["w1_hh"])
    b1 = _reorder_gates(params["b1"])
    w2_ih = _reorder_gates(params["w2_ih"])
    w2_hh = _reorder_gates(params["w2_hh"])
    b2 = _reorder_gates(params["b2"])

    # Zero-pad the output head to a 128-lane multiple.
    w_out = jnp.zeros((H, F_pad), jnp.float32).at[:, :F].set(params["w_out"])
    b_out = jnp.zeros((1, F_pad), jnp.float32).at[:, :F].set(params["b_out"])

    vmem = pl.BlockSpec(memory_space=pltpu.MemorySpace.VMEM)
    out = pl.pallas_call(
        _lstm_decoder_kernel,
        out_shape=jax.ShapeDtypeStruct((B * _S, F_pad), jnp.float32),
        in_specs=[vmem] * 9,
        out_specs=vmem,
        scratch_shapes=[pltpu.VMEM((B, _S, 4 * H), jnp.float32),
                        pltpu.VMEM((B * _S, H), jnp.float32)],
    )(x.astype(jnp.float32),
      w1_ih, w1_hh, b1,
      w2_ih, w2_hh, b2,
      w_out, b_out)

    # repeat_interleave + zero initial state => every seq_len "batch" row of
    # the LSTM is bitwise identical, so broadcasting one computed row to
    # seq_len is exact.  NOTE: this shortcut is only valid while the module
    # has zero initial state, no inter-layer dropout and a constant input
    # along the repeated axis.
    y = out.reshape(B, _S, F_pad)[:, :1, :F]
    return jnp.broadcast_to(y, (B, seq_len, F))


def reference_forward(x, p, seq_len):
    """Pure-JAX reference for correctness checking (full seq_len batch)."""
    B, E = x.shape
    xr = jnp.broadcast_to(x[:, None, :], (B, seq_len, E))

    def run_lstm(xs, w_ih, w_hh, b):
        H = w_hh.shape[0]

        def step(carry, x_t):
            h, c = carry
            gates = x_t @ w_ih + h @ w_hh + b[0]
            i, f, g, o = jnp.split(gates, 4, axis=-1)
            i = jax.nn.sigmoid(i)
            f = jax.nn.sigmoid(f)
            g = jnp.tanh(g)
            o = jax.nn.sigmoid(o)
            c = f * c + i * g
            h = o * jnp.tanh(c)
            return (h, c), h

        h0 = jnp.zeros((xs.shape[1], H), xs.dtype)
        (_, _), hs = lax.scan(step, (h0, h0), xs)
        return hs

    h1 = run_lstm(xr, p["w1_ih"], p["w1_hh"], p["b1"])
    h2 = run_lstm(h1, p["w2_ih"], p["w2_hh"], p["b2"])
    return h2 @ p["w_out"] + p["b_out"][0]


if __name__ == "__main__":
    # small shapes consistent with the module
    B = 2            # input dim 0 (time axis for the batch_first=False LSTM)
    seq_len = 8      # repeat factor -> LSTM batch axis
    E = 32           # embedding_dim
    H = 32           # hidden_dim
    F = 4            # n_features

    key = jax.random.PRNGKey(0)
    keys = jax.random.split(key, 9)
    bound = 1.0 / jnp.sqrt(jnp.float32(H))

    def u(k, shape):
        return jax.random.uniform(k, shape, jnp.float32, -bound, bound)

    # Deterministic synthetic parameters. PyTorch stores weight_ih as (4H, in),
    # weight_hh as (4H, H) and two bias vectors; here we keep the transposed
    # (in, 4H) layout, gate order (i, f, g, o), and a single combined bias
    # (bias_ih + bias_hh).  The wrapper permutes gate columns for the kernel.
    params = {
        "w1_ih": u(keys[0], (E, 4 * H)),
        "w1_hh": u(keys[1], (H, 4 * H)),
        "b1":    u(keys[2], (1, 4 * H)),
        "w2_ih": u(keys[3], (H, 4 * H)),
        "w2_hh": u(keys[4], (H, 4 * H)),
        "b2":    u(keys[5], (1, 4 * H)),
        "w_out": u(keys[6], (H, F)),
        "b_out": u(keys[7], (1, F)),
    }
    x = jax.random.normal(keys[8], (B, E), jnp.float32)

    y = lstm_decoder2_forward(x, params, seq_len)
    jax.block_until_ready(y)

    assert y.shape == (B, seq_len, F), y.shape
    y_ref = reference_forward(x, params, seq_len)
    assert jnp.allclose(y, y_ref, rtol=1e-4, atol=1e-4), float(
        jnp.max(jnp.abs(y - y_ref)))

    print("KERNEL_OK")
</pallas_src>

<mosaic_0001>
module attributes {stable_mosaic.version = 11 : i64} {
  func.func @_lstm_decoder_kernel(%arg0: memref<2x32xf32, #tpu.memory_space<vmem>>, %arg1: memref<32x128xf32, #tpu.memory_space<vmem>>, %arg2: memref<32x128xf32, #tpu.memory_space<vmem>>, %arg3: memref<1x128xf32, #tpu.memory_space<vmem>>, %arg4: memref<32x128xf32, #tpu.memory_space<vmem>>, %arg5: memref<32x128xf32, #tpu.memory_space<vmem>>, %arg6: memref<1x128xf32, #tpu.memory_space<vmem>>, %arg7: memref<32x128xf32, #tpu.memory_space<vmem>>, %arg8: memref<1x128xf32, #tpu.memory_space<vmem>>, %arg9: memref<16x128xf32, #tpu.memory_space<vmem>>, %arg10: memref<2x8x128xf32, #tpu.memory_space<vmem>>, %arg11: memref<16x32xf32, #tpu.memory_space<vmem>>) attributes {dimension_semantics = [], scalar_prefetch = 0 : i64, scratch_operands = 2 : i64, tpu.core_type = #tpu.core_type<tc>} {
    %c0 = arith.constant 0 : index
    %c0_0 = arith.constant 0 : index
    %0 = vector.load %arg0[%c0, %c0_0] : memref<2x32xf32, #tpu.memory_space<vmem>>, vector<2x32xf32>
    %c0_1 = arith.constant 0 : index
    %c0_2 = arith.constant 0 : index
    %1 = vector.load %arg1[%c0_1, %c0_2] : memref<32x128xf32, #tpu.memory_space<vmem>>, vector<32x128xf32>
    %cst = arith.constant dense<0.000000e+00> : vector<2x128xf32>
    %2 = tpu.matmul %0, %1, %cst {dimension_numbers = #tpu.dot_dimension_numbers<[1], [0], [0], [1], [0, 0, 1, 1], [], []>} : vector<2x32xf32>, vector<32x128xf32>, vector<2x128xf32> -> vector<2x128xf32>
    %c0_3 = arith.constant 0 : index
    %c0_4 = arith.constant 0 : index
    %3 = vector.load %arg3[%c0_3, %c0_4] : memref<1x128xf32, #tpu.memory_space<vmem>>, vector<1x128xf32>
    %4 = vector.broadcast %3 : vector<1x128xf32> to vector<2x128xf32>
    %5 = arith.addf %2, %4 : vector<2x128xf32>
    %6 = vector.shape_cast %5 : vector<2x128xf32> to vector<2x1x128xf32>
    %7 = vector.shape_cast %6 : vector<2x1x128xf32> to vector<2x1x128xf32>
    %8 = vector.broadcast %7 : vector<2x1x128xf32> to vector<2x8x128xf32>
    %c0_5 = arith.constant 0 : index
    %c0_6 = arith.constant 0 : index
    %c0_7 = arith.constant 0 : index
    %9 = vector.load %arg10[%c0_5, %c0_6, %c0_7] : memref<2x8x128xf32, #tpu.memory_space<vmem>>, vector<2x8x128xf32>
    tpu.vector_store %arg10[%c0_5, %c0_6, %c0_7], %8 {strides = array<i32>} : memref<2x8x128xf32, #tpu.memory_space<vmem>>, vector<2x8x128xf32>,
    %c0_8 = arith.constant 0 : index
    %c0_9 = arith.constant 0 : index
    %10 = vector.load %arg6[%c0_8, %c0_9] : memref<1x128xf32, #tpu.memory_space<vmem>>, vector<1x128xf32>
    %11 = vector.shape_cast %10 : vector<1x128xf32> to vector<1x128xf32>
    %12 = vector.broadcast %11 : vector<1x128xf32> to vector<8x128xf32>
    %cst_10 = arith.constant 0.000000e+00 : f32
    %13 = vector.broadcast %cst_10 : f32 to vector<8x32xf32>
    %c0_i32 = arith.constant 0 : i32
    %c0_11 = arith.constant 0 : index
    %c0_12 = arith.constant 0 : index
    %14 = vector.load %arg5[%c0_11, %c0_12] : memref<32x128xf32, #tpu.memory_space<vmem>>, vector<32x128xf32>
    %cst_13 = arith.constant dense<0.000000e+00> : vector<8x128xf32>
    %15 = tpu.matmul %13, %14, %cst_13 {dimension_numbers = #tpu.dot_dimension_numbers<[1], [0], [0], [1], [0, 0, 1, 1], [], []>} : vector<8x32xf32>, vector<32x128xf32>, vector<8x128xf32> -> vector<8x128xf32>
    %16 = arith.index_cast %c0_i32 : i32 to index
    %c0_14 = arith.constant 0 : index
    %c0_15 = arith.constant 0 : index
    %17 = vector.load %arg10[%16, %c0_14, %c0_15] : memref<2x8x128xf32, #tpu.memory_space<vmem>>, vector<1x8x128xf32>
    %18 = vector.shape_cast %17 : vector<1x8x128xf32> to vector<8x128xf32>
    %c0_16 = arith.constant 0 : index
    %c0_17 = arith.constant 0 : index
    %19 = vector.load %arg2[%c0_16, %c0_17] : memref<32x128xf32, #tpu.memory_space<vmem>>, vector<32x128xf32>
    %cst_18 = arith.constant dense<0.000000e+00> : vector<8x128xf32>
    %20 = tpu.matmul %13, %19, %cst_18 {dimension_numbers = #tpu.dot_dimension_numbers<[1], [0], [0], [1], [0, 0, 1, 1], [], []>} : vector<8x32xf32>, vector<32x128xf32>, vector<8x128xf32> -> vector<8x128xf32>
    %21 = arith.addf %18, %20 : vector<8x128xf32>
    %22 = vector.extract_strided_slice %21 {offsets = [0, 0], sizes = [8, 96], strides = [1, 1]} : vector<8x128xf32> to vector<8x96xf32>
    %23 = arith.negf %22 : vector<8x96xf32>
    %24 = math.exp %23 : vector<8x96xf32>
    %cst_19 = arith.constant 1.000000e+00 : f32
    %25 = vector.broadcast %cst_19 : f32 to vector<8x96xf32>
    %26 = arith.addf %25, %24 : vector<8x96xf32>
    %27 = arith.divf %25, %26 : vector<8x96xf32>
    %28 = vector.extract_strided_slice %21 {offsets = [0, 96], sizes = [8, 32], strides = [1, 1]} : vector<8x128xf32> to vector<8x32xf32>
    %29 = math.tanh %28 : vector<8x32xf32>
    %30 = vector.extract_strided_slice %27 {offsets = [0, 0], sizes = [8, 32], strides = [1, 1]} : vector<8x96xf32> to vector<8x32xf32>
    %31 = vector.extract_strided_slice %27 {offsets = [0, 32], sizes = [8, 32], strides = [1, 1]} : vector<8x96xf32> to vector<8x32xf32>
    %32 = vector.extract_strided_slice %27 {offsets = [0, 64], sizes = [8, 32], strides = [1, 1]} : vector<8x96xf32> to vector<8x32xf32>
    %33 = arith.mulf %31, %13 : vector<8x32xf32>
    %34 = arith.mulf %30, %29 : vector<8x32xf32>
    %35 = arith.addf %33, %34 : vector<8x32xf32>
    %36 = math.tanh %35 : vector<8x32xf32>
    %37 = arith.mulf %32, %36 : vector<8x32xf32>
    %c0_20 = arith.constant 0 : index
    %c0_21 = arith.constant 0 : index
    %38 = vector.load %arg4[%c0_20, %c0_21] : memref<32x128xf32, #tpu.memory_space<vmem>>, vector<32x128xf32>
    %cst_22 = arith.constant dense<0.000000e+00> : vector<8x128xf32>
    %39 = tpu.matmul %37, %38, %cst_22 {dimension_numbers = #tpu.dot_dimension_numbers<[1], [0], [0], [1], [0, 0, 1, 1], [], []>} : vector<8x32xf32>, vector<32x128xf32>, vector<8x128xf32> -> vector<8x128xf32>
    %40 = arith.addf %39, %15 : vector<8x128xf32>
    %41 = arith.addf %40, %12 : vector<8x128xf32>
    %42 = vector.extract_strided_slice %41 {offsets = [0, 0], sizes = [8, 96], strides = [1, 1]} : vector<8x128xf32> to vector<8x96xf32>
    %43 = arith.negf %42 : vector<8x96xf32>
    %44 = math.exp %43 : vector<8x96xf32>
    %cst_23 = arith.constant 1.000000e+00 : f32
    %45 = vector.broadcast %cst_23 : f32 to vector<8x96xf32>
    %46 = arith.addf %45, %44 : vector<8x96xf32>
    %47 = arith.divf %45, %46 : vector<8x96xf32>
    %48 = vector.extract_strided_slice %41 {offsets = [0, 96], sizes = [8, 32], strides = [1, 1]} : vector<8x128xf32> to vector<8x32xf32>
    %49 = math.tanh %48 : vector<8x32xf32>
    %50 = vector.extract_strided_slice %47 {offsets = [0, 0], sizes = [8, 32], strides = [1, 1]} : vector<8x96xf32> to vector<8x32xf32>
    %51 = vector.extract_strided_slice %47 {offsets = [0, 32], sizes = [8, 32], strides = [1, 1]} : vector<8x96xf32> to vector<8x32xf32>
    %52 = vector.extract_strided_slice %47 {offsets = [0, 64], sizes = [8, 32], strides = [1, 1]} : vector<8x96xf32> to vector<8x32xf32>
    %53 = arith.mulf %51, %13 : vector<8x32xf32>
    %54 = arith.mulf %50, %49 : vector<8x32xf32>
    %55 = arith.addf %53, %54 : vector<8x32xf32>
    %56 = math.tanh %55 : vector<8x32xf32>
    %57 = arith.mulf %52, %56 : vector<8x32xf32>
    %c8_i32 = arith.constant 8 : i32
    %58 = arith.muli %c0_i32, %c8_i32 : i32
    %59 = tpu.assume_multiple %58, 8 : i32
    %60 = arith.index_cast %59 : i32 to index
    %c0_24 = arith.constant 0 : index
    %61 = vector.load %arg11[%60, %c0_24] : memref<16x32xf32, #tpu.memory_space<vmem>>, vector<8x32xf32>
    tpu.vector_store %arg11[%60, %c0_24], %57 {strides = array<i32>} : memref<16x32xf32, #tpu.memory_space<vmem>>, vector<8x32xf32>,
    %c1_i32 = arith.constant 1 : i32
    %c0_25 = arith.constant 0 : index
    %c0_26 = arith.constant 0 : index
    %62 = vector.load %arg5[%c0_25, %c0_26] : memref<32x128xf32, #tpu.memory_space<vmem>>, vector<32x128xf32>
    %cst_27 = arith.constant dense<0.000000e+00> : vector<8x128xf32>
    %63 = tpu.matmul %57, %62, %cst_27 {dimension_numbers = #tpu.dot_dimension_numbers<[1], [0], [0], [1], [0, 0, 1, 1], [], []>} : vector<8x32xf32>, vector<32x128xf32>, vector<8x128xf32> -> vector<8x128xf32>
    %64 = arith.index_cast %c1_i32 : i32 to index
    %c0_28 = arith.constant 0 : index
    %c0_29 = arith.constant 0 : index
    %65 = vector.load %arg10[%64, %c0_28, %c0_29] : memref<2x8x128xf32, #tpu.memory_space<vmem>>, vector<1x8x128xf32>
    %66 = vector.shape_cast %65 : vector<1x8x128xf32> to vector<8x128xf32>
    %c0_30 = arith.constant 0 : index
    %c0_31 = arith.constant 0 : index
    %67 = vector.load %arg2[%c0_30, %c0_31] : memref<32x128xf32, #tpu.memory_space<vmem>>, vector<32x128xf32>
    %cst_32 = arith.constant dense<0.000000e+00> : vector<8x128xf32>
    %68 = tpu.matmul %37, %67, %cst_32 {dimension_numbers = #tpu.dot_dimension_numbers<[1], [0], [0], [1], [0, 0, 1, 1], [], []>} : vector<8x32xf32>, vector<32x128xf32>, vector<8x128xf32> -> vector<8x128xf32>
    %69 = arith.addf %66, %68 : vector<8x128xf32>
    %70 = vector.extract_strided_slice %69 {offsets = [0, 0], sizes = [8, 96], strides = [1, 1]} : vector<8x128xf32> to vector<8x96xf32>
    %71 = arith.negf %70 : vector<8x96xf32>
    %72 = math.exp %71 : vector<8x96xf32>
    %cst_33 = arith.constant 1.000000e+00 : f32
    %73 = vector.broadcast %cst_33 : f32 to vector<8x96xf32>
    %74 = arith.addf %73, %72 : vector<8x96xf32>
    %75 = arith.divf %73, %74 : vector<8x96xf32>
    %76 = vector.extract_strided_slice %69 {offsets = [0, 96], sizes = [8, 32], strides = [1, 1]} : vector<8x128xf32> to vector<8x32xf32>
    %77 = math.tanh %76 : vector<8x32xf32>
    %78 = vector.extract_strided_slice %75 {offsets = [0, 0], sizes = [8, 32], strides = [1, 1]} : vector<8x96xf32> to vector<8x32xf32>
    %79 = vector.extract_strided_slice %75 {offsets = [0, 32], sizes = [8, 32], strides = [1, 1]} : vector<8x96xf32> to vector<8x32xf32>
    %80 = vector.extract_strided_slice %75 {offsets = [0, 64], sizes = [8, 32], strides = [1, 1]} : vector<8x96xf32> to vector<8x32xf32>
    %81 = arith.mulf %79, %35 : vector<8x32xf32>
    %82 = arith.mulf %78, %77 : vector<8x32xf32>
    %83 = arith.addf %81, %82 : vector<8x32xf32>
    %84 = math.tanh %83 : vector<8x32xf32>
    %85 = arith.mulf %80, %84 : vector<8x32xf32>
    %c0_34 = arith.constant 0 : index
    %c0_35 = arith.constant 0 : index
    %86 = vector.load %arg4[%c0_34, %c0_35] : memref<32x128xf32, #tpu.memory_space<vmem>>, vector<32x128xf32>
    %cst_36 = arith.constant dense<0.000000e+00> : vector<8x128xf32>
    %87 = tpu.matmul %85, %86, %cst_36 {dimension_numbers = #tpu.dot_dimension_numbers<[1], [0], [0], [1], [0, 0, 1, 1], [], []>} : vector<8x32xf32>, vector<32x128xf32>, vector<8x128xf32> -> vector<8x128xf32>
    %88 = arith.addf %87, %63 : vector<8x128xf32>
    %89 = arith.addf %88, %12 : vector<8x128xf32>
    %90 = vector.extract_strided_slice %89 {offsets = [0, 0], sizes = [8, 96], strides = [1, 1]} : vector<8x128xf32> to vector<8x96xf32>
    %91 = arith.negf %90 : vector<8x96xf32>
    %92 = math.exp %91 : vector<8x96xf32>
    %cst_37 = arith.constant 1.000000e+00 : f32
    %93 = vector.broadcast %cst_37 : f32 to vector<8x96xf32>
    %94 = arith.addf %93, %92 : vector<8x96xf32>
    %95 = arith.divf %93, %94 : vector<8x96xf32>
    %96 = vector.extract_strided_slice %89 {offsets = [0, 96], sizes = [8, 32], strides = [1, 1]} : vector<8x128xf32> to vector<8x32xf32>
    %97 = math.tanh %96 : vector<8x32xf32>
    %98 = vector.extract_strided_slice %95 {offsets = [0, 0], sizes = [8, 32], strides = [1, 1]} : vector<8x96xf32> to vector<8x32xf32>
    %99 = vector.extract_strided_slice %95 {offsets = [0, 32], sizes = [8, 32], strides = [1, 1]} : vector<8x96xf32> to vector<8x32xf32>
    %100 = vector.extract_strided_slice %95 {offsets = [0, 64], sizes = [8, 32], strides = [1, 1]} : vector<8x96xf32> to vector<8x32xf32>
    %101 = arith.mulf %99, %55 : vector<8x32xf32>
    %102 = arith.mulf %98, %97 : vector<8x32xf32>
    %103 = arith.addf %101, %102 : vector<8x32xf32>
    %104 = math.tanh %103 : vector<8x32xf32>
    %105 = arith.mulf %100, %104 : vector<8x32xf32>
    %c8_i32_38 = arith.constant 8 : i32
    %106 = arith.muli %c1_i32, %c8_i32_38 : i32
    %107 = tpu.assume_multiple %106, 8 : i32
    %108 = arith.index_cast %107 : i32 to index
    %c0_39 = arith.constant 0 : index
    %109 = vector.load %arg11[%108, %c0_39] : memref<16x32xf32, #tpu.memory_space<vmem>>, vector<8x32xf32>
    tpu.vector_store %arg11[%108, %c0_39], %105 {strides = array<i32>} : memref<16x32xf32, #tpu.memory_space<vmem>>, vector<8x32xf32>,
    %c2_i32 = arith.constant 2 : i32
    %c0_40 = arith.constant 0 : index
    %c0_41 = arith.constant 0 : index
    %110 = vector.load %arg11[%c0_40, %c0_41] : memref<16x32xf32, #tpu.memory_space<vmem>>, vector<16x32xf32>
    %c0_42 = arith.constant 0 : index
    %c0_43 = arith.constant 0 : index
    %111 = vector.load %arg7[%c0_42, %c0_43] : memref<32x128xf32, #tpu.memory_space<vmem>>, vector<32x128xf32>
    %cst_44 = arith.constant dense<0.000000e+00> : vector<16x128xf32>
    %112 = tpu.matmul %110, %111, %cst_44 {dimension_numbers = #tpu.dot_dimension_numbers<[1], [0], [0], [1], [0, 0, 1, 1], [], []>} : vector<16x32xf32>, vector<32x128xf32>, vector<16x128xf32> -> vector<16x128xf32>
    %c0_45 = arith.constant 0 : index
    %c0_46 = arith.constant 0 : index
    %113 = vector.load %arg8[%c0_45, %c0_46] : memref<1x128xf32, #tpu.memory_space<vmem>>, vector<1x128xf32>
    %114 = vector.broadcast %113 : vector<1x128xf32> to vector<16x128xf32>
    %115 = arith.addf %112, %114 : vector<16x128xf32>
    %c0_47 = arith.constant 0 : index
    %c0_48 = arith.constant 0 : index
    %116 = vector.load %arg9[%c0_47, %c0_48] : memref<16x128xf32, #tpu.memory_space<vmem>>, vector<16x128xf32>
    tpu.vector_store %arg9[%c0_47, %c0_48], %115 {strides = array<i32>} : memref<16x128xf32, #tpu.memory_space<vmem>>, vector<16x128xf32>,
    return
  }
}

</mosaic_0001>

<bundles_post_ra>
// kernel: tpu_custom_call.1
= control target key start
LH: loop header
LB: loop body
LE: loop exit
PB: predicated region body
PF: predicated region fallthrough
CT: control target
= control target key end

     0   :  { %14 = vsyncpa [#allocation5], 0  ;;  %s1592_s0 = inlined_call_operand.hbm [shape: f32[2,32], index: 0, kind: input, shape index: {}]   ;;  %s1593_s1 = inlined_call_operand.hbm [shape: f32[32,128], index: 1, kind: input, shape index: {}]   ;;  %s1594_s2 = inlined_call_operand.hbm [shape: f32[32,128], index: 2, kind: input, shape index: {}]   ;;  %s1595_s3 = inlined_call_operand.vmem [shape: f32[1,128], index: 3, kind: input, shape index: {}]   ;;  %s1596_s4 = inlined_call_operand.hbm [shape: f32[32,128], index: 4, kind: input, shape index: {}]   ;;  %s1597_s5 = inlined_call_operand.hbm [shape: f32[32,128], index: 5, kind: input, shape index: {}]   ;;  %s1598_s6 = inlined_call_operand.vmem [shape: f32[1,128], index: 6, kind: input, shape index: {}]   ;;  %s1599_s7 = inlined_call_operand.hbm [shape: f32[32,128], index: 7, kind: input, shape index: {}]   ;;  %s1600_s8 = inlined_call_operand.vmem [shape: f32[1,128], index: 8, kind: input, shape index: {}]   ;;  %s1601_s9 = inlined_call_operand.hbm [shape: f32[16,128], index: 9, kind: output, shape index: {}]  }
   0x1   :  { %15 = vsyncpa [#allocation8], 0 }
   0x2   :  { %16 = vsyncpa [#allocation11], 0 }
   0x3   :  { %17 = vsyncpa [#allocation14], 0 }
   0x4   :  { %18 = vsyncpa [#allocation6], 0  ;;  %s1334_s30 = smov [#allocation7]   ;;  %s1170_s13 = scalar_lea.hbm %s1593_s1, 512 }
   0x5   :  { %s34_s10 = sshll.u32 %s1334_s30, 4  ;;  %p1171_p0 = scmp.ne.s32.totalorder %s1593_s1, %s1170_s13  ;;  %s35_s10 = int_to_ptr.vmem [resolvable:$true] %s34_s10 }
   0x6   :  { %p1174_p1 = scmp.lt.u32.totalorder %s1170_s13, %s1593_s1 }
   0x8   :  { %p1176_p2 = pnand %p1174_p1, %p1171_p0 }
   0xa   :  { %1179 = shalt.err (!%p1176_p2)
}
   0xb   :  { %s1180_s18 = scalar_lea.vmem %s35_s10, 512  ;;  %p1185_p4 = scmp.lt.s32.totalorder %s35_s10, %s35_s10 }
   0xc   :  { %p1181_p3 = scmp.ne.s32.totalorder %s35_s10, %s1180_s18  ;;  %p1186_p5 = scmp.lt.s32.totalorder %s1180_s18, %s1180_s18 }
   0xe   :  { %p1187_p6 = por %p1186_p5, %p1185_p4 }
  0x10   :  { %p1188_p7 = pnand %p1187_p6, %p1181_p3 }
  0x12   :  { %1191 = shalt.err (!%p1188_p7)
}
  0x13   :  { %s1335_s19 = smov 128   ;;  %s1336_s20 = smov 8  }
  0x14   :  { %40 = dma.hbm_to_vmem [thread:$0]  %s1593_s1, 512, %s35_s10, [#allocation8], %s1335_s19, %s1335_s19, %s1336_s20  }
  0x15   :  { %s1337_s23 = smov [#allocation10]   ;;  %s1338_s25 = smov [#allocation4]  }
  0x16   :  { %s60_s24 = sshll.u32 %s1337_s23, 4  ;;  %s25_s26 = sshll.u32 %s1338_s25, 4  ;;  %s61_s24 = int_to_ptr.vmem [resolvable:$true] %s60_s24  ;;  %s26_s26 = int_to_ptr.vmem [resolvable:$true] %s25_s26 }
  0x17   :  { %s1192_s29 = scalar_lea.hbm %s1596_s4, 512 }
  0x18   :  { %p1193_p8 = scmp.ne.s32.totalorder %s1596_s4, %s1192_s29  ;;  %p1196_p9 = scmp.lt.u32.totalorder %s1192_s29, %s1596_s4 }
  0x1a   :  { %p1198_p10 = pnand %p1196_p9, %p1193_p8 }
  0x1c   :  { %1201 = shalt.err (!%p1198_p10)
}
  0x1d   :  { %s1202_s1 = scalar_lea.vmem %s61_s24, 512  ;;  %p1207_p12 = scmp.lt.s32.totalorder %s61_s24, %s61_s24 }
  0x1e   :  { %p1203_p11 = scmp.ne.s32.totalorder %s61_s24, %s1202_s1  ;;  %p1208_p13 = scmp.lt.s32.totalorder %s1202_s1, %s1202_s1 }
  0x20   :  { %p1209_p0 = por %p1208_p13, %p1207_p12 }
  0x22   :  { %p1210_p1 = pnand %p1209_p0, %p1203_p11 }
  0x24   :  { %1213 = shalt.err (!%p1210_p1)
}
  0x25   :  { %66 = dma.hbm_to_vmem [thread:$0]  %s1596_s4, 512, %s61_s24, [#allocation11], %s1335_s19, %s1335_s19, %s1336_s20  }
  0x26   :  { %s1214_s17 = scalar_lea.hbm %s1592_s0, 32 }
  0x27   :  { %p1215_p2 = scmp.ne.s32.totalorder %s1592_s0, %s1214_s17  ;;  %p1218_p3 = scmp.lt.u32.totalorder %s1214_s17, %s1592_s0 }
  0x29   :  { %p1220_p4 = pnand %p1218_p3, %p1215_p2 }
  0x2b   :  { %1223 = shalt.err (!%p1220_p4)
}
  0x2c   :  { %s1224_s25 = scalar_lea.vmem %s26_s26, 32  ;;  %p1229_p6 = scmp.lt.s32.totalorder %s26_s26, %s26_s26 }
  0x2d   :  { %p1225_p5 = scmp.ne.s32.totalorder %s26_s26, %s1224_s25  ;;  %p1230_p7 = scmp.lt.s32.totalorder %s1224_s25, %s1224_s25 }
  0x2f   :  { %p1231_p8 = por %p1230_p7, %p1229_p6 }
  0x31   :  { %p1232_p9 = pnand %p1231_p8, %p1225_p5 }
  0x33   :  { %1235 = shalt.err (!%p1232_p9)
}
  0x34   :  { %28 = dma.hbm_to_vmem [thread:$0]  %s1592_s0, 32, %s26_s26, [#allocation5]  }
  0x35   :  { %s1339_s27 = smov [#allocation9]   ;;  %s1340_s29 = smov [#allocation12]  }
  0x36   :  { %s46_s28 = sshll.u32 %s1339_s27, 4  ;;  %s72_s30 = sshll.u32 %s1340_s29, 4  ;;  %s47_s28 = int_to_ptr.vmem [resolvable:$true] %s46_s28  ;;  %s73_s30 = int_to_ptr.vmem [resolvable:$true] %s72_s30 }
  0x37   :  { %s1236_s13 = scalar_lea.hbm %s1594_s2, 512 }
  0x38   :  { %p1237_p10 = scmp.ne.s32.totalorder %s1594_s2, %s1236_s13  ;;  %p1240_p11 = scmp.lt.u32.totalorder %s1236_s13, %s1594_s2 }
  0x3a   :  { %p1242_p12 = pnand %p1240_p11, %p1237_p10 }
  0x3c   :  { %1245 = shalt.err (!%p1242_p12)
}
  0x3d   :  { %s1246_s0 = scalar_lea.vmem %s47_s28, 512  ;;  %p1251_p0 = scmp.lt.s32.totalorder %s47_s28, %s47_s28 }
  0x3e   :  { %p1247_p13 = scmp.ne.s32.totalorder %s47_s28, %s1246_s0  ;;  %p1252_p1 = scmp.lt.s32.totalorder %s1246_s0, %s1246_s0 }
  0x40   :  { %p1253_p2 = por %p1252_p1, %p1251_p0 }
  0x42   :  { %p1254_p3 = pnand %p1253_p2, %p1247_p13 }
  0x44   :  { %1257 = shalt.err (!%p1254_p3)
}
  0x45   :  { %52 = dma.hbm_to_vmem [thread:$0]  %s1594_s2, 512, %s47_s28, [#allocation8], %s1335_s19, %s1335_s19, %s1336_s20  }
  0x46   :  { %s1258_s21 = scalar_lea.hbm %s1597_s5, 512 }
  0x47   :  { %p1259_p4 = scmp.ne.s32.totalorder %s1597_s5, %s1258_s21  ;;  %p1262_p5 = scmp.lt.u32.totalorder %s1258_s21, %s1597_s5 }
  0x49   :  { %p1264_p6 = pnand %p1262_p5, %p1259_p4 }
  0x4b   :  { %1267 = shalt.err (!%p1264_p6)
}
  0x4c   :  { %s1268_s24 = scalar_lea.vmem %s73_s30, 512  ;;  %p1273_p8 = scmp.lt.s32.totalorder %s73_s30, %s73_s30 }
  0x4d   :  { %p1269_p7 = scmp.ne.s32.totalorder %s73_s30, %s1268_s24  ;;  %p1274_p9 = scmp.lt.s32.totalorder %s1268_s24, %s1268_s24 }
  0x4f   :  { %p1275_p10 = por %p1274_p9, %p1273_p8 }
  0x51   :  { %p1276_p11 = pnand %p1275_p10, %p1269_p7 }
  0x53   :  { %1279 = shalt.err (!%p1276_p11)
}
  0x54   :  { %78 = dma.hbm_to_vmem [thread:$0]  %s1597_s5, 512, %s73_s30, [#allocation11], %s1335_s19, %s1335_s19, %s1336_s20  }
  0x55   :  { %s1341_s28 = smov [#allocation13]   ;;  %s1280_s13 = scalar_lea.hbm %s1599_s7, 512 }
  0x56   :  { %s86_s29 = sshll.u32 %s1341_s28, 4  ;;  %p1281_p12 = scmp.ne.s32.totalorder %s1599_s7, %s1280_s13  ;;  %s87_s29 = int_to_ptr.vmem [resolvable:$true] %s86_s29 }
  0x57   :  { %p1284_p13 = scmp.lt.u32.totalorder %s1280_s13, %s1599_s7 }
  0x59   :  { %p1286_p0 = pnand %p1284_p13, %p1281_p12 }
  0x5b   :  { %1289 = shalt.err (!%p1286_p0)
}
  0x5c   :  { %s1290_s0 = scalar_lea.vmem %s87_s29, 512  ;;  %p1295_p2 = scmp.lt.s32.totalorder %s87_s29, %s87_s29 }
  0x5d   :  { %p1291_p1 = scmp.ne.s32.totalorder %s87_s29, %s1290_s0  ;;  %p1296_p3 = scmp.lt.s32.totalorder %s1290_s0, %s1290_s0 }
  0x5f   :  { %p1297_p4 = por %p1296_p3, %p1295_p2 }
  0x61   :  { %p1298_p5 = pnand %p1297_p4, %p1291_p1 }
  0x63   :  { %1301 = shalt.err (!%p1298_p5)
}
  0x64   :  { %92 = dma.hbm_to_vmem [thread:$0]  %s1599_s7, 512, %s87_s29, [#allocation14], %s1335_s19, %s1335_s19, %s1336_s20  }
  0x65   :  { %1324 = dma.done.wait [#allocation5], 32  }
  0x66   :  { %1325 = vsyncadd [#allocation5], 4294967264 }
  0x67   :  { %1326 = dma.done.wait [#allocation8], 1024  }
  0x68   :  { %1327 = vsyncadd [#allocation8], 4294966272 }
  0x69   :  { %1328 = dma.done.wait [#allocation11], 1024  }
  0x6a   :  { %1329 = vsyncadd [#allocation11], 4294966272 }
  0x6b   :  { %1330 = dma.done.wait [#allocation14], 512  }
  0x6c   :  { %1331 = vsyncadd [#allocation14], 4294966784  ;;  %v1342_v0 = vmov 0.0|0.0   ;;  %vm1343_vm0 = vmmov 0   ;;  %v1344_v1 = vmov 0.0   ;;  %v114_v2 = vld [vmem:[#allocation7] sm:$0xff]  ;;  %v203_v17 = vlaneseq }
  0x6d   :  { %1073 = vmatprep.subr.bf16.mxu0 %v1342_v0  ;;  %993 = vmatprep.mubr.msk.f32.mxu0 %vm1343_vm0, %v1344_v1  ;;  %v115_v3 = vld [vmem:[#allocation7 + $0x8] sm:$0xff]  ;;  %v116_v4 = vld [vmem:[#allocation7 + $0x10] sm:$0xff]  ;;  %v117_v6 = vld [vmem:[#allocation7 + $0x18] sm:$0xff]  ;;  %vm125_vm1 = vcmask 261120   ;;  %v1345_v15 = vmov 1966171168  }
  0x6e   :  { %1079 = vmatprep.subr.bf16.mxu1 %v1342_v0  ;;  %1004 = vmatprep.mubr.msk.f32.mxu1 %vm1343_vm0, %v1344_v1  ;;  %v1074_v5 = vpack.c.bf16 %v115_v3, %v114_v2  ;;  %v1077_v7 = vpack.c.bf16 %v117_v6, %v116_v4  ;;  %v319_v8 = vld [vmem:[#allocation9] sm:$0xff]  ;;  %v320_v9 = vld [vmem:[#allocation9 + $0x8] sm:$0xff]  ;;  %v113_v10 = vld [vmem:[#allocation4] sm:$0x3]  ;;  %v201_v16 = vunpack.c.l.s4 %v1345_v15  ;;  %v204_v19 = vshrl.u32 %v203_v17, 7  ;;  %s1346_s16 = smov 32  }
  0x6f   :  { %v1493_v11 = vpack.c.bf16 %v320_v9, %v319_v8  ;;  %v321_v12 = vld [vmem:[#allocation9 + $0x10] sm:$0xff]  ;;  %v322_v13 = vld [vmem:[#allocation9 + $0x18] sm:$0xff]  ;;  %v930_v20 = vld [vmem:[%s1595_s3] ss:$0 sm:$0xff]  ;;  %s1347_s3 = smov 64   ;;  %s1348_s22 = smov [#allocation15]  }
  0x70   :  { %1075 = vmatpush3.bf16.msra.mxu0 %v1074_v5  ;;  %v1498_v14 = vpack.c.bf16 %v322_v13, %v321_v12  ;;  %v202_v18 = vunpack.c.0.s8 %v201_v16  ;;  %v224_v26 = vsub.s32 0, %v204_v19  ;;  %v241_v45 = vld [vmem:[#allocation12] sm:$0xff]  ;;  %v242_v46 = vld [vmem:[#allocation12 + $0x8] sm:$0xff]  ;;  %v243_v47 = vld [vmem:[#allocation12 + $0x10] sm:$0xff]  ;;  %s915_s23 = sshll.u32 %s1348_s22, 4  ;;  %s916_s23 = int_to_ptr.vmem [resolvable:$true] %s915_s23 }
  0x71   :  { %1076 = vmatprep.subr.bf16.mxu0 %v1342_v0  ;;  %v1080_v48 = vpack.c.bf16 %v242_v46, %v241_v45  ;;  %v244_v49 = vld [vmem:[#allocation12 + $0x18] sm:$0xff]  ;;  %v418_v51 = vld [vmem:[#allocation10] sm:$0xff]  ;;  %v419_v52 = vld [vmem:[#allocation10 + $0x8] sm:$0xff]  ;;  %s1302_s25 = scalar_lea.vmem %s916_s23, 256  ;;  %p1307_p7 = scmp.lt.s32.totalorder %s916_s23, %s916_s23 }
  0x72   :  { %v205_v21 = vsub.s32 %v202_v18, %v204_v19  ;;  %v1083_v50 = vpack.c.bf16 %v244_v49, %v243_v47  ;;  %v1520_v53 = vpack.c.bf16 %v419_v52, %v418_v51  ;;  %v420_v54 = vld [vmem:[#allocation10 + $0x10] sm:$0xff]  ;;  %v421_v55 = vld [vmem:[#allocation10 + $0x18] sm:$0xff]  ;;  %v1545_v63 = vld [vmem:[%s1598_s6] ss:$0 sm:$0xff]  ;;  %p1303_p6 = scmp.ne.s32.totalorder %s916_s23, %s1302_s25  ;;  %p1308_p8 = scmp.lt.s32.totalorder %s1302_s25, %s1302_s25 }
  0x73   :  { %1081 = vmatpush3.bf16.msra.mxu1 %v1080_v48  ;;  %v1527_v57 = vpack.c.bf16 %v421_v55, %v420_v54  ;;  %v817_v54 = vld [vmem:[#allocation13 + $0x8] sm:$0xff] }
  0x74   :  { %1078 = vmatpush3.bf16.msra.mxu0 %v1077_v7  ;;  %1082 = vmatprep.subr.bf16.mxu1 %v1342_v0  ;;  %p1309_p9 = por %p1308_p8, %p1307_p7 }
  0x75   :  { %1085 = vmatprep.subr.bf16.mxu0 %v1342_v0 }
  0x76   :  { %p1310_p10 = pnand %p1309_p9, %p1303_p6 }
  0x77   :  { %994 = vmatmul.mubr.msk.f32.vlgmr.msra.gmra.mrb[0].mxu0 %vm125_vm1, %v113_v10  ;;  %1084 = vmatpush3.bf16.msra.mxu1 %v1083_v50 }
  0x78   :  { %1087 = vmatpush3.bf16.msra.mxu0 %v1493_v11  ;;  %1015 = vmatprep.mubr.msk.f32.mxu0 %vm1343_vm0, %v1344_v1 }
  0x79   :  { %1088 = vmatprep.subr.bf16.mxu0 %v1342_v0  ;;  %1091 = vmatprep.subr.bf16.mxu1 %v1342_v0 }
  0x7a   :  { %1005 = vmatmul.mubr.f32.vlgmr.msra.gmra.mrb[0].mxu1 %v1344_v1 }
  0x7b   :  { %1093 = vmatpush3.bf16.msra.mxu1 %v1520_v53  ;;  %1026 = vmatprep.mubr.msk.f32.mxu1 %vm1343_vm0, %v1344_v1 }
  0x7c   :  { %1090 = vmatpush3.bf16.msra.mxu0 %v1498_v14  ;;  %1094 = vmatprep.subr.bf16.mxu1 %v1342_v0 }
  0x7d   :  { %1097 = vmatprep.subr.bf16.mxu0 %v1342_v0 }
  0x7f   :  { %1016 = vmatmul.mubr.f32.vlgmr.msra.gmra.mrb[2].mxu0 %v1344_v1  ;;  %1096 = vmatpush3.bf16.msra.mxu1 %v1527_v57 }
  0x80   :  { %1037 = vmatprep.mubr.msk.f32.mxu0 %vm1343_vm0, %v1344_v1  ;;  %1099 = vmatpush3.bf16.msra.mxu0 %v1080_v48 }
  0x81   :  { %1100 = vmatprep.subr.bf16.mxu0 %v1342_v0  ;;  %1103 = vmatprep.subr.bf16.mxu1 %v1342_v0 }
  0x84   :  { %1102 = vmatpush3.bf16.msra.mxu0 %v1083_v50 }
  0x85   :  { %1109 = vmatprep.subr.bf16.mxu0 %v1342_v0 }
 0x14a   :  { %v195_v22 = vpop.f32.mrb[0].mxu0 }
 0x14b   :  { %v196_v23 = vadd.f32 %v930_v20, %v195_v22  ;;  %v995_v24 = vpop.f32.mrb[1].mxu0 }
 0x14d   :  { %v206_v25 = vrot.slane %v196_v23, %v205_v21  ;;  %v314_v60 = vpop.f32.mrb[0].mxu1 }
 0x14e   :  { %v1006_v61 = vpop.f32.mrb[1].mxu1 }
 0x14f   :  { %v207_v27 = vcombine.high %v206_v25, %v206_v25  ;;  %v214_v28 = vrot.slane %v206_v25, %v205_v21 }
 0x151   :  { %v225_v29 = vrot.slane %v214_v28, %v224_v26  ;;  %v221_v30 = vrot.slane %v207_v27, %v205_v21 }
 0x152   :  { %v389_v31 = vpop.f32.mrb[2].mxu0 }
 0x153   :  { %v393_v32 = vadd.f32 %v389_v31, %v225_v29  ;;  %v1017_v33 = vpop.f32.mrb[3].mxu0  ;;  %v1511_v34 = vrot.slane %v221_v30, %v224_v26 }
 0x155   :  { %1138 = vtanh.f32 %v393_v32  ;;  %v933_v36 = vmul.f32 -1.442695, %v393_v32 }
 0x157   :  { %1140 = vpow2.f32 %v933_v36 }
 0x15f   :  { %v1139_v35 = vpop.eup %1138 }
 0x160   :  { %403 = vrot.lane.b32.xlu0 %v1139_v35, %s1346_s16 }
 0x161   :  { %v1141_v37 = vpop.eup %1140 }
 0x162   :  { %v397_v38 = vadd.f32 1.0, %v1141_v37 }
 0x164   :  { %1142 = vrcp.f32 %v397_v38 }
 0x16e   :  { %v1143_v39 = vpop.eup %1142 }
 0x16f   :  { %v401_v42 = vmul.f32 0.0, %v1143_v39 }
 0x1d2   :  { %v404_v40 = vpop.permute.xlu0 %403 }
 0x1d3   :  { %v406_v41 = vmul.f32 %v1143_v39, %v404_v40 }
 0x1d5   :  { %408 = vrot.lane.b32.xlu0 %v406_v41, %s1346_s16 }
 0x247   :  { %v409_v43 = vpop.permute.xlu0 %408 }
 0x248   :  { %v1515_v44 = vadd.f32 %v409_v43, %v401_v42 }
 0x24a   :  { %1144 = vtanh.f32 %v1515_v44 }
 0x254   :  { %v1145_v56 = vpop.eup %1144 }
 0x255   :  { %414 = vrot.lane.b32.xlu1 %v1145_v56, %s1346_s16  ;;  %v818_v56 = vld [vmem:[#allocation13 + $0x10] sm:$0xff] }
 0x2c7   :  { %v415_v58 = vpop.permute.xlu1 %414 }
 0x2c8   :  { %v417_v59 = vmul.f32 %v1143_v39, %v415_v58 }
 0x2ca   :  { %423 = vrot.lane.b32.xlu1 %v417_v59, %s1347_s3 }
 0x33c   :  { %v424_v62 = vpop.permute.xlu1 %423 }
 0x33d   :  { %1027 = vmatmul.mubr.msk.f32.vlgmr.msra.gmra.mrb[2].mxu1 %vm125_vm1, %v424_v62 }
 0x33e   :  { %1105 = vmatpush3.bf16.msra.mxu1 %v1493_v11  ;;  %1048 = vmatprep.mubr.msk.f32.mxu1 %vm1343_vm0, %v1344_v1 }
 0x33f   :  { %1106 = vmatprep.subr.bf16.mxu1 %v1342_v0 }
 0x342   :  { %1108 = vmatpush3.bf16.msra.mxu1 %v1498_v14 }
 0x345   :  { %1049 = vmatmul.mubr.msk.f32.vlgmr.msra.gmra.mrb[4].mxu1 %vm125_vm1, %v424_v62 }
 0x410   :  { %v493_v2 = vpop.f32.mrb[2].mxu1 }
 0x411   :  { %v494_v3 = vadd.f32 %v493_v2, %v314_v60  ;;  %v1028_v4 = vpop.f32.mrb[3].mxu1 }
 0x413   :  { %v497_v5 = vadd.f32 %v1545_v63, %v494_v3 }
 0x415   :  { %1146 = vtanh.f32 %v497_v5  ;;  %v935_v11 = vmul.f32 -1.442695, %v497_v5 }
 0x418   :  { %v675_v6 = vpop.f32.mrb[4].mxu1 }
 0x419   :  { %v679_v7 = vadd.f32 %v675_v6, %v1511_v34  ;;  %v1050_v8 = vpop.f32.mrb[5].mxu1 }
 0x41b   :  { %1148 = vtanh.f32 %v679_v7  ;;  %v938_v12 = vmul.f32 -1.442695, %v679_v7 }
 0x41c   :  { %1150 = vpow2.f32 %v935_v11 }
 0x41d   :  { %1152 = vpow2.f32 %v938_v12 }
 0x41f   :  { %v1147_v9 = vpop.eup %1146 }
 0x420   :  { %507 = vrot.lane.b32.xlu0 %v1147_v9, %s1346_s16 }
 0x425   :  { %v1149_v10 = vpop.eup %1148 }
 0x426   :  { %689 = vrot.lane.b32.xlu1 %v1149_v10, %s1346_s16  ;;  %v1151_v13 = vpop.eup %1150 }
 0x427   :  { %v501_v14 = vadd.f32 1.0, %v1151_v13  ;;  %v1153_v15 = vpop.eup %1152 }
 0x428   :  { %v683_v16 = vadd.f32 1.0, %v1153_v15 }
 0x429   :  { %1154 = vrcp.f32 %v501_v14 }
 0x42a   :  { %1156 = vrcp.f32 %v683_v16 }
 0x433   :  { %v1155_v17 = vpop.eup %1154 }
 0x434   :  { %v1157_v20 = vpop.eup %1156  ;;  %v505_v23 = vmul.f32 0.0, %v1155_v17 }
 0x435   :  { %v687_v26 = vmul.f32 %v1157_v20, %v1515_v44 }
 0x492   :  { %v508_v18 = vpop.permute.xlu0 %507 }
 0x493   :  { %v510_v19 = vmul.f32 %v1155_v17, %v508_v18 }
 0x495   :  { %512 = vrot.lane.b32.xlu0 %v510_v19, %s1346_s16 }
 0x498   :  { %v690_v21 = vpop.permute.xlu1 %689 }
 0x499   :  { %v692_v22 = vmul.f32 %v1157_v20, %v690_v21 }
 0x49b   :  { %694 = vrot.lane.b32.xlu1 %v692_v22, %s1346_s16 }
 0x507   :  { %v513_v24 = vpop.permute.xlu0 %512 }
 0x508   :  { %v515_v25 = vadd.f32 %v513_v24, %v505_v23 }
 0x50a   :  { %1158 = vtanh.f32 %v515_v25 }
 0x50d   :  { %v695_v27 = vpop.permute.xlu1 %694 }
 0x50e   :  { %v697_v28 = vadd.f32 %v695_v27, %v687_v26 }
 0x510   :  { %1160 = vtanh.f32 %v697_v28 }
 0x514   :  { %v1159_v29 = vpop.eup %1158 }
 0x515   :  { %518 = vrot.lane.b32.xlu0 %v1159_v29, %s1346_s16 }
 0x51a   :  { %v1161_v30 = vpop.eup %1160 }
 0x51b   :  { %700 = vrot.lane.b32.xlu1 %v1161_v30, %s1346_s16 }
 0x587   :  { %v519_v31 = vpop.permute.xlu0 %518 }
 0x588   :  { %v521_v32 = vmul.f32 %v1155_v17, %v519_v31 }
 0x58a   :  { %523 = vrot.lane.b32.xlu0 %v521_v32, %s1347_s3 }
 0x58d   :  { %v701_v33 = vpop.permute.xlu1 %700 }
 0x58e   :  { %v703_v34 = vmul.f32 %v1157_v20, %v701_v33 }
 0x590   :  { %709 = vrot.lane.b32.xlu1 %v703_v34, %s1347_s3 }
 0x5fc   :  { %v524_v35 = vpop.permute.xlu0 %523 }
 0x5fd   :  { %526 = vst.msk [vmem:[#allocation3] sm:$0xff] %vm125_vm1, %v524_v35  ;;  %1038 = vmatmul.mubr.msk.f32.vlgmr.msra.gmra.mrb[4].mxu0 %vm125_vm1, %v524_v35 }
 0x5fe   :  { %1111 = vmatpush3.bf16.msra.mxu0 %v1520_v53  ;;  %1059 = vmatprep.mubr.msk.f32.mxu0 %vm1343_vm0, %v1344_v1  ;;  %v816_v53 = vld [vmem:[#allocation13] sm:$0xff] }
 0x5ff   :  { %1112 = vmatprep.subr.bf16.mxu0 %v1342_v0  ;;  %v1115_v55 = vpack.c.bf16 %v817_v54, %v816_v53 }
 0x601   :  { %1116 = vmatprep.subr.bf16.mxu1 %v1115_v55 }
 0x602   :  { %1114 = vmatpush3.bf16.msra.mxu0 %v1527_v57  ;;  %v710_v36 = vpop.permute.xlu1 %709  ;;  %v819_v57 = vld [vmem:[#allocation13 + $0x18] sm:$0xff]  ;;  %1118 = vmatpush3.bf16.msra.mxu1 %v1115_v55 }
 0x603   :  { %v1119_v58 = vpack.c.bf16 %v819_v57, %v818_v56 }
 0x604   :  { %v814_v37 = vld [vmem:[#allocation3] sm:$0xff] }
 0x605   :  { %1060 = vmatmul.mubr.msk.f32.vlgmr.msra.gmra.mrb[6].mxu0 %vm125_vm1, %v710_v36  ;;  %1070 = vmatprep.mubr.msk.f32.mxu1 %vm125_vm1, %v814_v37 }
 0x606   :  { %1120 = vmatprep.subr.bf16.mxu1 %v1119_v58 }
 0x607   :  { %1122 = vmatpush3.bf16.msra.mxu1 %v1119_v58 }
 0x6d0   :  { %v599_v38 = vpop.f32.mrb[4].mxu0 }
 0x6d1   :  { %v1039_v39 = vpop.f32.mrb[5].mxu0 }
 0x6d8   :  { %v779_v40 = vpop.f32.mrb[6].mxu0 }
 0x6d9   :  { %v780_v41 = vadd.f32 %v779_v40, %v599_v38  ;;  %v1061_v42 = vpop.f32.mrb[7].mxu0 }
 0x6db   :  { %v783_v43 = vadd.f32 %v1545_v63, %v780_v41  ;;  %v941_v63 = vld [vmem:[%s1600_s8] ss:$0 sm:$0xff] }
 0x6dd   :  { %1162 = vtanh.f32 %v783_v43  ;;  %v940_v0 = vmul.f32 -1.442695, %v783_v43 }
 0x6df   :  { %1164 = vpow2.f32 %v940_v0 }
 0x6e7   :  { %v1163_v44 = vpop.eup %1162 }
 0x6e8   :  { %793 = vrot.lane.b32.xlu0 %v1163_v44, %s1346_s16 }
 0x6e9   :  { %v1165_v1 = vpop.eup %1164 }
 0x6ea   :  { %v787_v45 = vadd.f32 1.0, %v1165_v1 }
 0x6ec   :  { %1166 = vrcp.f32 %v787_v45 }
 0x6f6   :  { %v1167_v46 = vpop.eup %1166 }
 0x6f7   :  { %v791_v49 = vmul.f32 %v1167_v46, %v515_v25 }
 0x75a   :  { %v794_v47 = vpop.permute.xlu0 %793 }
 0x75b   :  { %v796_v48 = vmul.f32 %v1167_v46, %v794_v47 }
 0x75d   :  { %798 = vrot.lane.b32.xlu1 %v796_v48, %s1346_s16 }
 0x7cf   :  { %v799_v50 = vpop.permute.xlu1 %798 }
 0x7d0   :  { %v801_v51 = vadd.f32 %v799_v50, %v791_v49 }
 0x7d2   :  { %1168 = vtanh.f32 %v801_v51 }
 0x7dc   :  { %v1169_v52 = vpop.eup %1168 }
 0x7dd   :  { %804 = vrot.lane.b32.xlu0 %v1169_v52, %s1346_s16 }
 0x84f   :  { %v805_v59 = vpop.permute.xlu0 %804 }
 0x850   :  { %v807_v60 = vmul.f32 %v1167_v46, %v805_v59 }
 0x852   :  { %809 = vrot.lane.b32.xlu1 %v807_v60, %s1347_s3 }
 0x8c4   :  { %v810_v61 = vpop.permute.xlu1 %809 }
 0x8c5   :  { %813 = vst.msk [vmem:[#allocation3 + $0x8] sm:$0xff] %vm125_vm1, %v810_v61 }
 0x8cc   :  { %v815_v62 = vld [vmem:[#allocation3 + $0x8] sm:$0xff] }
 0x8cd   :  { %1071 = vmatmul.mubr.msk.f32.vlgmr.msra.gmra.mrb[6].mxu1 %vm125_vm1, %v815_v62 }
 0x9a0   :  { %v1072_v2 = vpop.f32.mrb[6].mxu1 }
 0x9a1   :  { %v905_v3 = vadd.f32 %v1072_v2, %v941_v63  ;;  %v899_v4 = vpop.f32.mrb[7].mxu1 }
 0x9a2   :  { %v900_v5 = vadd.f32 %v941_v63, %v899_v4 }
 0x9a3   :  { %909 = vst [vmem:[#allocation15 + $0x8] sm:$0xff] %v905_v3 }
 0x9a4   :  { %908 = vst [vmem:[#allocation15] sm:$0xff] %v900_v5 }
 0x9a5   :  { %1313 = shalt.err (!%p1310_p10)
}
 0x9a6   :  { %s1314_s8 = scalar_lea.hbm %s1601_s9, 256 }
 0x9a7   :  { %p1315_p11 = scmp.ne.s32.totalorder %s1601_s9, %s1314_s8  ;;  %p1318_p12 = scmp.lt.u32.totalorder %s1314_s8, %s1601_s9 }
 0x9a9   :  { %p1320_p13 = pnand %p1318_p12, %p1315_p11 }
 0x9ab   :  { %1323 = shalt.err (!%p1320_p13)
}
 0x9ac   :  { %921 = dma.vmem_to_hbm [thread:$0]  %s916_s23, 256, %s1601_s9, [#allocation6], %s1335_s19, %s1335_s19, %s1336_s20  }
 0x9ad   :  { %1332 = dma.done.wait [#allocation6], 256  }
 0x9ae   :  { %1333 = vsyncadd [#allocation6], 4294967040 }
 0x9af   :  { %925 = vsyncpa [#allocation5], 1 }
 0x9b0   :  { %926 = vsyncpa [#allocation8], 1 }
 0x9b1   :  { %927 = vsyncpa [#allocation11], 1 }
 0x9b2   :  { %928 = vsyncpa [#allocation14], 1 }
 0x9b3   :  { %929 = vsyncpa [#allocation6], 1 }

</bundles_post_ra>
